<compile_context>
chip_gen: v5e
topology: v5e:2x2
jax: 0.10.0
libtpu: 0.0.40
codegen_flags: <defaults>
</compile_context>

<pallas_src>
import jax
import jax.numpy as jnp
import numpy as np
from jax import lax
from jax.experimental import pallas as pl
from jax.experimental.pallas import tpu as pltpu


def _upsample_conv_kernel(x_ref, w_ref, b_ref, o_ref):
    """One (batch, spatial-tile) grid step.

    x_ref: (1, Kp, TM)    9-tap im2col slab (K zero-padded to Kp), M on lanes.
    w_ref: (Pout, Kp)     zero-structured polyphase weight, Pout = 4 * Cout.
    b_ref: (Pout, 1)      bias, tiled over the 4 phases.
    o_ref: (1, Pout, TM)  phase-major, channel-major output tile.
    """
    acc = jnp.dot(w_ref[...], x_ref[0],
                  preferred_element_type=jnp.float32)        # (Pout, TM) on the MXU
    o_ref[0] = (acc + b_ref[...]).astype(o_ref.dtype)


def _pick_spatial_tile(M, max_tile=2048):
    """Largest lane tile (multiple of 128, divisor of M, <= max_tile)."""
    if M % 128 != 0:
        return M                      # full extent is always legal
    divisors = [t for t in range(128, M, 128) if M % t == 0]
    good = [t for t in divisors if t <= max_tile]
    if good:
        return max(good)
    return min(divisors) if divisors else M


def upsample_conv(x_nchw, w_oihw, bias):
    """Equivalent of UpSample.forward: nearest-2x upsample, then 3x3 conv, pad 1."""
    N, Cin, H, W = x_nchw.shape
    Cout = w_oihw.shape[0]
    M = H * W
    Pout = 4 * Cout                    # 4 output phases, channel-major
    K = 9 * Cin                        # 9 tap slabs
    Kp = ((K + 7) // 8) * 8            # sublane-align the contraction dim

    # ---- wrapper glue 1: 9-tap im2col on the ORIGINAL resolution -------------
    # cols[n, (s*3+t)*Cin + c, i*W + j] = x_pad[n, c, s + i, t + j]
    x_pad = jnp.pad(x_nchw, ((0, 0), (0, 0), (1, 1), (1, 1)))   # (N, Cin, H+2, W+2)
    cols = jnp.stack([x_pad[:, :, s:s + H, t:t + W]
                      for s in range(3) for t in range(3)], axis=1)
    cols = cols.reshape(N, K, M)
    if Kp != K:
        cols = jnp.pad(cols, ((0, 0), (0, Kp - K), (0, 0)))

    # ---- wrapper glue 2: zero-structured polyphase weight --------------------
    # A 3x3 conv on the nearest-2x upsample is exactly 4 phase-specific 2x2
    # convs on the original-resolution (zero-padded) image.  Output row 2i+p
    # reads padded-input row i+s with original tap dy iff G[p, s, dy] = 1
    # (same along width), so the combined weight has zeros at the unused taps.
    G = jnp.array([[[1., 0., 0.], [0., 1., 1.], [0., 0., 0.]],
                   [[0., 0., 0.], [1., 1., 0.], [0., 0., 1.]]],
                  dtype=w_oihw.dtype)                            # (p, s, dy)
    w_comb = jnp.einsum('psd,ocde,qte->pqostc', G, w_oihw, G)    # (2,2,Co,3,3,Ci)
    w_comb = w_comb.reshape(Pout, K)
    if Kp != K:
        w_comb = jnp.pad(w_comb, ((0, 0), (0, Kp - K)))
    b_phase = jnp.tile(bias, 4).reshape(Pout, 1)

    # ---- single-matmul Pallas kernel over a (batch, spatial-tile) grid --------
    TM = _pick_spatial_tile(M)
    grid = (N, M // TM)

    cost = pl.CostEstimate(
        flops=2 * N * Pout * M * Kp,
        transcendentals=0,
        bytes_accessed=4 * (N * Kp * M + Pout * Kp + Pout + N * Pout * M),
    )

    out_phases = pl.pallas_call(
        _upsample_conv_kernel,
        out_shape=jax.ShapeDtypeStruct((N, Pout, M), x_nchw.dtype),
        grid=grid,
        in_specs=[
            pl.BlockSpec((1, Kp, TM), lambda b, m: (b, 0, m)),
            pl.BlockSpec((Pout, Kp), lambda b, m: (0, 0)),
            pl.BlockSpec((Pout, 1), lambda b, m: (0, 0)),
        ],
        out_specs=pl.BlockSpec((1, Pout, TM), lambda b, m: (b, 0, m)),
        compiler_params=pltpu.CompilerParams(
            dimension_semantics=("parallel", "parallel")),
        cost_estimate=cost,
    )(cols, w_comb, b_phase)

    # ---- wrapper glue 3: interleave the 4 phases back into (N, Cout, 2H, 2W) --
    out = out_phases.reshape(N, 2, 2, Cout, H, W)
    out = jnp.transpose(out, (0, 3, 4, 1, 5, 2))         # (N, Cout, H, p, W, q)
    return out.reshape(N, Cout, 2 * H, 2 * W)


def reference(x_nchw, w_oihw, bias):
    x_up = jnp.repeat(jnp.repeat(x_nchw, 2, axis=2), 2, axis=3)
    y = lax.conv_general_dilated(
        x_up, w_oihw, window_strides=(1, 1), padding=((1, 1), (1, 1)),
        dimension_numbers=("NCHW", "OIHW", "NCHW"))
    return y + bias[None, :, None, None]


if __name__ == "__main__":
    key = jax.random.PRNGKey(0)
    kx, kw, kb = jax.random.split(key, 3)

    in_channels, out_channels = 4, 8
    x = jax.random.normal(kx, (2, in_channels, 16, 16), dtype=jnp.float32)

    # Deterministic parameter init (PyTorch-like uniform(-1/sqrt(fan_in), ...)).
    fan_in = in_channels * 3 * 3
    bound = 1.0 / np.sqrt(fan_in)
    w = jax.random.uniform(kw, (out_channels, in_channels, 3, 3),
                           minval=-bound, maxval=bound, dtype=jnp.float32)
    b = jax.random.uniform(kb, (out_channels,), minval=-bound, maxval=bound,
                           dtype=jnp.float32)

    out = jax.block_until_ready(upsample_conv(x, w, b))
    ref = jax.block_until_ready(reference(x, w, b))

    assert out.shape == (2, out_channels, 32, 32), out.shape
    np.testing.assert_allclose(np.asarray(out), np.asarray(ref),
                               rtol=1e-4, atol=1e-4)
    print("KERNEL_OK")
</pallas_src>

<mosaic_0001>
module attributes {stable_mosaic.version = 11 : i64} {
  func.func @_upsample_conv_kernel(%arg0: i32, %arg1: i32, %arg2: memref<1x40x128xf32, #tpu.memory_space<vmem>>, %arg3: memref<32x40xf32, #tpu.memory_space<vmem>>, %arg4: memref<32x1xf32, #tpu.memory_space<vmem>>, %arg5: memref<1x32x128xf32, #tpu.memory_space<vmem>>) attributes {dimension_semantics = [#tpu.dimension_semantics<parallel>, #tpu.dimension_semantics<parallel>], iteration_bounds = array<i64: 2, 2>, scalar_prefetch = 0 : i64, scratch_operands = 0 : i64, tpu.core_type = #tpu.core_type<tc>, window_params = [{transform_indices = @transform_0, window_bounds = array<i64: 1, 40, 128>}, {pipeline_mode = #tpu.pipeline_mode<synchronous>, transform_indices = @transform_1, window_bounds = array<i64: 32, 40>}, {pipeline_mode = #tpu.pipeline_mode<synchronous>, transform_indices = @transform_2, window_bounds = array<i64: 32, 1>}, {transform_indices = @transform_3, window_bounds = array<i64: 1, 32, 128>}]} {
    %c0 = arith.constant 0 : index
    %c0_0 = arith.constant 0 : index
    %0 = vector.load %arg3[%c0, %c0_0] : memref<32x40xf32, #tpu.memory_space<vmem>>, vector<32x40xf32>
    %c0_1 = arith.constant 0 : index
    %c0_2 = arith.constant 0 : index
    %c0_3 = arith.constant 0 : index
    %1 = vector.load %arg2[%c0_1, %c0_2, %c0_3] : memref<1x40x128xf32, #tpu.memory_space<vmem>>, vector<1x40x128xf32>
    %2 = vector.shape_cast %1 : vector<1x40x128xf32> to vector<40x128xf32>
    %cst = arith.constant dense<0.000000e+00> : vector<32x128xf32>
    %3 = tpu.matmul %0, %2, %cst {dimension_numbers = #tpu.dot_dimension_numbers<[1], [0], [0], [1], [0, 0, 1, 1], [], []>} : vector<32x40xf32>, vector<40x128xf32>, vector<32x128xf32> -> vector<32x128xf32>
    %c0_4 = arith.constant 0 : index
    %c0_5 = arith.constant 0 : index
    %4 = vector.load %arg4[%c0_4, %c0_5] : memref<32x1xf32, #tpu.memory_space<vmem>>, vector<32x1xf32>
    %5 = vector.broadcast %4 : vector<32x1xf32> to vector<32x128xf32>
    %6 = arith.addf %3, %5 : vector<32x128xf32>
    %c0_6 = arith.constant 0 : index
    %c0_7 = arith.constant 0 : index
    %c0_8 = arith.constant 0 : index
    %7 = vector.load %arg5[%c0_6, %c0_7, %c0_8] : memref<1x32x128xf32, #tpu.memory_space<vmem>>, vector<1x32x128xf32>
    %8 = vector.shape_cast %7 : vector<1x32x128xf32> to vector<32x128xf32>
    %9 = vector.shape_cast %6 : vector<32x128xf32> to vector<1x32x128xf32>
    tpu.vector_store %arg5[%c0_6, %c0_7, %c0_8], %9 {strides = array<i32>} : memref<1x32x128xf32, #tpu.memory_space<vmem>>, vector<1x32x128xf32>,
    return
  }
  func.func @transform_0(%arg0: i32, %arg1: i32) -> (i32, i32, i32) {
    %c0_i32 = arith.constant 0 : i32
    %c0_i32_0 = arith.constant 0 : i32
    return %arg0, %c0_i32, %arg1 : i32, i32, i32
  }
  func.func @transform_1(%arg0: i32, %arg1: i32) -> (i32, i32) {
    %c0_i32 = arith.constant 0 : i32
    %c0_i32_0 = arith.constant 0 : i32
    %c0_i32_1 = arith.constant 0 : i32
    return %c0_i32, %c0_i32_0 : i32, i32
  }
  func.func @transform_2(%arg0: i32, %arg1: i32) -> (i32, i32) {
    %c0_i32 = arith.constant 0 : i32
    %c0_i32_0 = arith.constant 0 : i32
    %c0_i32_1 = arith.constant 0 : i32
    return %c0_i32, %c0_i32_0 : i32, i32
  }
  func.func @transform_3(%arg0: i32, %arg1: i32) -> (i32, i32, i32) {
    %c0_i32 = arith.constant 0 : i32
    %c0_i32_0 = arith.constant 0 : i32
    return %arg0, %c0_i32, %arg1 : i32, i32, i32
  }
}

</mosaic_0001>

<bundles_post_ra>
// kernel: tpu_custom_call.1
= control target key start
LH: loop header
LB: loop body
LE: loop exit
PB: predicated region body
PF: predicated region fallthrough
CT: control target
= control target key end

     0   :  { %8 = vsyncpa [#allocation3], 0  ;;  %s837_s0 = inlined_call_operand.hbm [shape: f32[2,40,256], index: 0, kind: input, shape index: {}]   ;;  %s838_s1 = inlined_call_operand.vmem [shape: f32[32,40], index: 1, kind: input, shape index: {}]   ;;  %s839_s2 = inlined_call_operand.vmem [shape: f32[32,1], index: 2, kind: input, shape index: {}]   ;;  %s840_s3 = inlined_call_operand.hbm [shape: f32[2,32,256], index: 3, kind: output, shape index: {}]  }
   0x1   :  { %10 = vsyncpa [#allocation3 + $0x1], 0 }
   0x2   :  { %11 = vsyncpa [#allocation4], 0 }
   0x3   :  { %13 = vsyncpa [#allocation4 + $0x1], 0  ;;  %s670_s12 = smov 0   ;;  %s672_s13 = smov 0  }
   0x4   :  { %s674_s14 = smov 0   ;;  %s676_s15 = smov 0  }
   0x5   :  { %s678_s16 = smov 0   ;;  %s680_s17 = smov 0  }
   0x6   :  { %s682_s18 = smov 0   ;;  %s684_s19 = smov 0  }
   0x7 LB: > { %s392_s20 = sadd.s32 4294967295, %s641_s19   ;;  %s393_s21 = sadd.s32 4294967294, %s641_s19   ;;  %s641_s19 = sphi %s684_s19, %s19_s19   ;;  %s637_s18 = sphi %s682_s18, %s859_s18   ;;  %s633_s17 = sphi %s680_s17, %s858_s17   ;;  %s629_s16 = sphi %s678_s16, %s857_s16   ;;  %s625_s15 = sphi %s676_s15, %s856_s15   ;;  %s621_s14 = sphi %s674_s14, %s855_s14   ;;  %s617_s13 = sphi %s672_s13, %s854_s13   ;;  %s613_s12 = sphi %s670_s12, %s853_s12  }
   0x8   : > { %s28_s22 = sadd.s32 1, %s633_s17  ;;  %s31_s23 = sadd.s32 1, %s637_s18 }
   0x9   : > { %p29_p0 = scmp.ge.s32.totalorder %s28_s22, 2  ;;  %s40_s24 = sadd.s32 1, %s621_s14 }
   0xa   : > { %p47_p1 = scmp.ne.s32.totalorder %s621_s14, %s617_s13  ;;  %p48_p2 = scmp.eq.s32.totalorder %s641_s19, 0 }
   0xb   : > { %s861_s22 = smov (%p29_p0, %s28_s22), 0  ;;  %s863_s23 = smov (!%p29_p0, %s31_s23), %s637_s18 }
   0xc   : > { %843 = sst [smem:[#allocation8_spill]] %s861_s22  ;;  %s36_s25 = ssub.s32 %s633_s17, %s861_s22 }
   0xd   : > { %p723_p3 = por %p48_p2, %p47_p1  ;;  %p33_p4 = scmp.ge.s32.totalorder %s863_s23, 2 }
   0xe   : > { %p53_p5 = scmp.ne.s32.totalorder %s617_s13, %s613_s12  ;;  %p54_p6 = scmp.eq.s32.totalorder %s392_s20, 0 }
   0xf   : > { %p121_p7 = scmp.eq.s32.totalorder %s392_s20, 3  ;;  %s865_s23 = smov (%p33_p4, %s863_s23), 0 }
  0x10   : > { %845 = sst [smem:[#allocation9_spill]] %s865_s23  ;;  %p731_p8 = por %p54_p6, %p53_p5 }
  0x11   : > { %p735_p9 = por %p121_p7, %p47_p1  ;;  %s35_s29 = ssub.s32 %s637_s18, %s865_s23 }
  0x12   : > { %p127_p10 = scmp.eq.s32.totalorder %s393_s21, 3  ;;  %s37_s30 = sor.u32 %s36_s25, %s35_s29 }
  0x13   : > { %p38_p11 = scmp.eq.s32.totalorder %s37_s30, 0  ;;  %p438_p13 = scmp.lt.s32.totalorder %s641_s19, 4 }
  0x14   : > { %p741_p12 = por %p127_p10, %p53_p5  ;;  %s153_s5 = sand.u32 1, %s621_s14  }
  0x15   : > { %s748_s6 = scalar_select %p38_p11, %s621_s14, %s40_s24  }
  0x16   : > { %s423_s7 = smul.u32 40, %s153_s5  ;;  %p431_p0 = pnand %p438_p13, %p723_p3 }
  0x17   : > { %849 = sst [smem:[#allocation10_spill]] %s748_s6  ;;  %s424_s8 = smul.u32 10, %s637_s18 }
  0x18   : > { %s157_s10 = scalar_lea.vmem [#allocation2], %s423_s7  ;;  %s154_s23 = scalar_lea.sflag [#allocation3], %s153_s5 }
  0x19   : > { %s161_s9 = sadd.s32 %s633_s17, %s424_s8  ;;  %s166_s11 = sshll.u32 %s157_s10, 4  ;;  %s167_s11 = int_to_ptr.vmem [resolvable:$true] %s166_s11 }
  0x1a   : > { %s396_s20 = sshll.u32 %s161_s9, 3  ;;  %s643_s24 = smov 256  }
  0x1b   : > { %s163_s29 = scalar_lea.hbm %s837_s0, %s396_s20  ;;  %s644_s22 = smov 128  }
  0x1c   : > { %s164_s30 = sshll.u32 %s163_s29, 4  ;;  %s645_s6 = smov 8   ;;  %s165_s30 = int_to_ptr.hbm [resolvable:$true] %s164_s30 }
  0x1d   : > { %433 = dma.hbm_to_vmem [thread:$0]  (!%p431_p0), %s165_s30, 640, %s167_s11, %s154_s23, %s643_s24, %s644_s22, %s645_s6  }
  0x1e   : > { %p397_p1 = scmp.ge.s32.totalorder %s641_s19, 1  ;;  %p174_p2 = scmp.lt.s32.totalorder %s641_s19, 5 }
  0x20   : > { %p175_p4 = pnand %p397_p1, %p174_p2 }
  0x21   : > { %s760_s26 = sand.u32 (!%p175_p4), 1, %s617_s13  }
  0x22   : > { %178 = sbr.rel (%p175_p4) target bundleno = 193 (0xc1), region = 32  ;;  %s181_s8 = scalar_lea.sflag (!%p175_p4), [#allocation3], %s760_s26 }
  0x23   : > { %s425_s7 = smul.u32 (!%p175_p4), 40, %s760_s26 }
  0x25   : > { %s184_s9 = scalar_lea.vmem (!%p175_p4), [#allocation2], %s425_s7 }
  0x27   : > { %604 = dma.done.wait (%p731_p8), %s181_s8, 640  }
  0x28   : > { %606 = vsyncadd (%p731_p8), %s181_s8, 4294966656  ;;  %v646_v0 = vmov 0   ;;  %v216_v1 = vld [vmem:[%s184_s9 + $0x20] sm:$0xff]  ;;  %v215_v2 = vld [vmem:[%s184_s9 + $0x18] sm:$0xff]  ;;  %vm241_vm0 = vcmask 326656   ;;  %s404_s22 = sshll.u32 %s629_s16, 3 }
  0x29   : > { %512 = vset.pattern.permute.xlu1 %v646_v0  ;;  %511 = vset.pattern.permute.xlu0 %v646_v0  ;;  %v214_v3 = vld [vmem:[%s184_s9 + $0x10] sm:$0xff]  ;;  %v213_v4 = vld [vmem:[%s184_s9 + $0x8] sm:$0xff]  ;;  %v212_v5 = vld [vmem:[%s184_s9] sm:$0xff]  ;;  %s298_s23 = sadd.s32 %s625_s15, %s404_s22  ;;  %s398_s27 = sshll.u32 %s760_s26, 5 }
  0x2a   : > { %265 = vmatpush.msra.mxu0 %v216_v1  ;;  %408 = vmatpush.msra.mxu1 %v216_v1  ;;  %v208_v6 = vld [vmem:[%s838_s1] sm:$0xff]  ;;  %v209_v7 = vld [vmem:[%s838_s1 + $0x8] sm:$0xff]  ;;  %v210_v8 = vld [vmem:[%s838_s1 + $0x10] sm:$0xff]  ;;  %s405_s5 = sshll.u32 %s298_s23, 3  ;;  %s207_s20 = scalar_lea.vmem [#allocation5], %s398_s27 }
  0x2b   : > { %409 = vmatpush.msra.mxu2 %v216_v1  ;;  %410 = vmatpush.msra.mxu3 %v216_v1  ;;  %v211_v9 = vld [vmem:[%s838_s1 + $0x18] sm:$0xff]  ;;  %v219_v10 = vld [vmem:[%s839_s2 + $0x10] sm:$0xff]  ;;  %v217_v11 = vld [vmem:[%s839_s2] sm:$0xff]  ;;  %s300_s11 = scalar_lea.hbm %s840_s3, %s405_s5  ;;  %s301_s21 = sshll.u32 %s207_s20, 4  ;;  %s302_s21 = int_to_ptr.vmem [resolvable:$true] %s301_s21 }
  0x2c   : > { %266 = vmatpush.msra.mxu0 %v215_v2  ;;  %411 = vmatpush.msra.mxu1 %v215_v2  ;;  %v220_v12 = vld [vmem:[%s839_s2 + $0x18] sm:$0xff]  ;;  %v218_v13 = vld [vmem:[%s839_s2 + $0x8] sm:$0xff]  ;;  %s303_s16 = sshll.u32 %s300_s11, 4  ;;  %s288_s15 = scalar_lea.sflag [#allocation4], %s760_s26  ;;  %s304_s16 = int_to_ptr.hbm [resolvable:$true] %s303_s16 }
  0x2d   : > { %412 = vmatpush.msra.mxu2 %v215_v2  ;;  %413 = vmatpush.msra.mxu3 %v215_v2  ;;  %s557_s25 = sshra.s32 %s304_s16, 4  ;;  %s563_s7 = scalar_lea.hbm %s840_s3, 128  ;;  %s558_s25 = int_to_ptr.hbm [resolvable:$true] %s557_s25 }
  0x2e   : > { %267 = vmatpush.msra.mxu0 %v214_v3  ;;  %414 = vmatpush.msra.mxu1 %v214_v3  ;;  %s559_s29 = scalar_lea.hbm %s558_s25, 32  ;;  %p564_p7 = scmp.lt.s32.totalorder %s558_s25, %s840_s3 }
  0x2f   : > { %415 = vmatpush.msra.mxu2 %v214_v3  ;;  %416 = vmatpush.msra.mxu3 %v214_v3  ;;  %p560_p3 = scmp.ne.s32.totalorder %s558_s25, %s559_s29  ;;  %p565_p8 = scmp.lt.s32.totalorder %s563_s7, %s559_s29 }
  0x30   : > { %268 = vmatpush.msra.mxu0 %v213_v4  ;;  %417 = vmatpush.msra.mxu1 %v213_v4 }
  0x31   : > { %418 = vmatpush.msra.mxu2 %v213_v4  ;;  %419 = vmatpush.msra.mxu3 %v213_v4  ;;  %p561_p5 = pnand %p560_p3, %p735_p9  ;;  %p566_p10 = por %p565_p8, %p564_p7 }
  0x32   : > { %269 = vmatpush.msra.mxu0 %v212_v5  ;;  %420 = vmatpush.msra.mxu1 %v212_v5 }
  0x33   : > { %421 = vmatpush.msra.mxu2 %v212_v5  ;;  %422 = vmatpush.msra.mxu3 %v212_v5  ;;  %p562_p6 = pneg %p561_p5 }
  0x34   : > { %399 = vmatmul.msk.f32.vlgmr.msra.gmra.mxu0 %vm241_vm0, %v208_v6  ;;  %400 = vmatmul.msk.f32.vlgmr.msra.gmra.mxu1 %vm241_vm0, %v209_v7 }
  0x35   : > { %401 = vmatmul.msk.f32.vlgmr.msra.gmra.mxu2 %vm241_vm0, %v210_v8  ;;  %402 = vmatmul.msk.f32.vlgmr.msra.gmra.mxu3 %vm241_vm0, %v211_v9  ;;  %p567_p11 = pnand %p566_p10, %p562_p6 }
  0x36   : > { %233 = vperm.xlu1 %512, %v219_v10   ;;  %223 = vperm.xlu0 %511, %v217_v11  }
  0x3e   : > { %238 = vperm.xlu1 %512, %v220_v12   ;;  %228 = vperm.xlu0 %511, %v218_v13  }
  0xa8   : > { %v224_v14 = vpop.permute.xlu0 %223  ;;  %v234_v15 = vpop.permute.xlu1 %233 }
  0xb0   : > { %v229_v16 = vpop.permute.xlu0 %228  ;;  %v239_v21 = vpop.permute.xlu1 %238 }
  0xb1   : > { %v271_v17 = vpop.f32.mrf.mxu0  ;;  %v274_v18 = vpop.f32.mrf.mxu1 }
  0xb2   : > { %v272_v19 = vadd.f32 %v271_v17, %v224_v14  ;;  %v275_v20 = vadd.f32 %v274_v18, %v229_v16 }
  0xb4   : > { %283 = vst [vmem:[%s207_s20] sm:$0xff] %v272_v19 }
  0xb5   : > { %284 = vst [vmem:[%s207_s20 + $0x8] sm:$0xff] %v275_v20 }
  0xb8   : > { %v277_v22 = vpop.f32.mrf.mxu2  ;;  %v280_v23 = vpop.f32.mrf.mxu3 }
  0xb9   : > { %v278_v24 = vadd.f32 %v277_v22, %v234_v15  ;;  %v281_v25 = vadd.f32 %v280_v23, %v239_v21 }
  0xbb   : > { %285 = vst [vmem:[%s207_s20 + $0x10] sm:$0xff] %v278_v24 }
  0xbc   : > { %286 = vst [vmem:[%s207_s20 + $0x18] sm:$0xff] %v281_v25 }
  0xbd   : > { %570 = shalt.err (!%p567_p11)
}
  0xbe   : > { %s647_s26 = smov 128   ;;  %s648_s22 = smov 256  }
  0xbf   : > { %s649_s23 = smov 8  }
  0xc0   : > { %428 = dma.vmem_to_hbm [thread:$0]  (%p735_p9), %s302_s21, 512, %s304_s16, %s288_s15, %s647_s26, %s648_s22, %s649_s23  }
  0xc1 PF: > { %p439_p13 = scmp.ge.s32.totalorder %s641_s19, 2  ;;  %s318_s27 = sand.u32 1, %s613_s12  }
  0xc2   : > { %s319_s5 = scalar_lea.sflag [#allocation4], %s318_s27 }
  0xc3   : > { %p435_p0 = pnand %p439_p13, %p741_p12 }
  0xc5   : > { %p436_p1 = pneg %p435_p0 }
  0xc7   : > { %608 = dma.done.wait (%p436_p1), %s319_s5, 512  }
  0xc8   : > { %610 = vsyncadd (%p436_p1), %s319_s5, 4294966784  ;;  %s19_s19 = sadd.s32 1, %s641_s19   ;;  %s850_s6 = sld [smem:[#allocation10_spill]] }
  0xc9   : > { %p16_p2 = scmp.ge.s32.totalorder %s19_s19, 6   ;;  %s851_s28 = sld [smem:[#allocation8_spill]] }
  0xca   : > { %s852_s10 = sld [smem:[#allocation9_spill]]  ;;  %s853_s12 = smov %s617_s13 }
  0xcb   : > { %s854_s13 = smov %s621_s14  ;;  %s856_s15 = smov %s633_s17 }
  0xcc   : > { %s857_s16 = smov %s637_s18  ;;  %18 = sbr.rel (!%p16_p2) target bundleno = 7 (0x7), region = 77 }
  0xce   : > { %s855_s14 = smov %s850_s6 }
  0xcf   : > { %s858_s17 = smov %s851_s28 }
  0xd0   : > { %s859_s18 = smov %s852_s10 }
  0xd1   :  { %325 = vsyncpa [#allocation3], 1 }
  0xd2   :  { %327 = vsyncpa [#allocation3 + $0x1], 1 }
  0xd3   :  { %328 = vsyncpa [#allocation4], 1 }
  0xd4   :  { %330 = vsyncpa [#allocation4 + $0x1], 1 }

</bundles_post_ra>
